<compile_context>
chip_gen: v6e
topology: v6e:2x2x1
jax: 0.10.0
libtpu: 0.0.40
codegen_flags: <defaults>
</compile_context>

<pallas_src>
import jax
import jax.numpy as jnp
from jax.experimental import pallas as pl
from jax.experimental.pallas import tpu as pltpu


def _make_y_net_kernel(in_features, hidden):
    """Builds the kernel for Linear(in)->hidden -> ReLU -> Linear(hidden)->1."""
    w1_off = 0
    b1_off = in_features * hidden
    w2_off = b1_off + hidden
    b2_off = w2_off + hidden

    def kernel(params_ref, xT_ref, o_ref):
        # params_ref: SMEM (in*h + h + h + 1,) f32  -- scalar reads
        # xT_ref:     VMEM (in_features, TILE_B) f32 (lane-major over batch)
        # o_ref:      VMEM (1, TILE_B) f32           (lane-dense store)
        cols = [xT_ref[k:k + 1, :] for k in range(in_features)]  # (1, TILE_B) each
        y = None
        for j in range(hidden):
            h = cols[0] * params_ref[w1_off + j * in_features]
            for k in range(1, in_features):
                h = h + cols[k] * params_ref[w1_off + j * in_features + k]
            h = h + params_ref[b1_off + j]
            h = jnp.maximum(h, 0.0)              # ReLU on the VPU
            c = h * params_ref[w2_off + j]
            y = c if y is None else y + c
        y = y + params_ref[b2_off]
        o_ref[...] = y.astype(o_ref.dtype)

    return kernel


def y_net_forward(x, w1, b1, w2, b2, *, tile_b=1024):
    """Pallas equivalent of y_net.forward.

    x:  (B, 3) f32
    w1: (5, 3) f32, b1: (5,) f32   (torch Linear(3, 5) layout)
    w2: (1, 5) f32, b2: (1,) f32   (torch Linear(5, 1) layout)
    returns (B, 1) f32
    """
    B, in_features = x.shape
    hidden, in2 = w1.shape
    out_features, h2 = w2.shape
    assert in2 == in_features and h2 == hidden and out_features == 1

    num_tiles = pl.cdiv(B, tile_b)
    b_pad = num_tiles * tile_b

    # Flatten all parameters into one small SMEM-resident f32 vector.
    params = jnp.concatenate(
        [w1.reshape(-1), b1.reshape(-1), w2.reshape(-1), b2.reshape(-1)]
    ).astype(jnp.float32)

    x = x.astype(jnp.float32)
    if b_pad != B:
        x = jnp.pad(x, ((0, b_pad - B), (0, 0)))
    # Feature-major layout: (3, B_pad) so batch sits on lanes inside the kernel.
    xT = x.T

    flops_per_row = 2 * in_features * hidden + hidden + 2 * hidden
    cost = pl.CostEstimate(
        flops=int(b_pad) * int(flops_per_row),
        transcendentals=0,
        bytes_accessed=int(b_pad) * (in_features + 1) * 4 + int(params.size) * 4,
    )

    out = pl.pallas_call(
        _make_y_net_kernel(in_features, hidden),
        out_shape=jax.ShapeDtypeStruct((1, b_pad), jnp.float32),
        grid_spec=pltpu.PrefetchScalarGridSpec(
            num_scalar_prefetch=0,
            grid=(num_tiles,),
            in_specs=[
                pl.BlockSpec(memory_space=pltpu.MemorySpace.SMEM),      # params
                pl.BlockSpec((in_features, tile_b), lambda i: (0, i)),  # x tile
            ],
            out_specs=pl.BlockSpec((1, tile_b), lambda i: (0, i)),
        ),
        compiler_params=pltpu.CompilerParams(
            dimension_semantics=("parallel",),
        ),
        cost_estimate=cost,
    )(params, xT)

    # Free reshape of the lane-dense slab back to the module's (B, 1) shape.
    return out.reshape(b_pad, 1)[:B]


if __name__ == "__main__":
    key = jax.random.PRNGKey(0)
    kx, k1w, k1b, k2w, k2b = jax.random.split(key, 5)

    B, IN, H, OUT = 2000, 3, 5, 1
    x = jax.random.normal(kx, (B, IN), dtype=jnp.float32)

    # Deterministic init mimicking torch.nn.Linear's U(-1/sqrt(fan_in), ...).
    bound1 = 1.0 / (IN ** 0.5)
    w1 = jax.random.uniform(k1w, (H, IN), jnp.float32, -bound1, bound1)
    b1 = jax.random.uniform(k1b, (H,), jnp.float32, -bound1, bound1)
    bound2 = 1.0 / (H ** 0.5)
    w2 = jax.random.uniform(k2w, (OUT, H), jnp.float32, -bound2, bound2)
    b2 = jax.random.uniform(k2b, (OUT,), jnp.float32, -bound2, bound2)

    y = y_net_forward(x, w1, b1, w2, b2, tile_b=512)
    jax.block_until_ready(y)

    # Plain-JAX reference of the PyTorch forward pass.
    h_ref = jnp.maximum(x @ w1.T + b1, 0.0)
    y_ref = h_ref @ w2.T + b2
    assert y.shape == (B, OUT)
    assert jnp.allclose(y, y_ref, atol=1e-5, rtol=1e-5)

    print("KERNEL_OK")
</pallas_src>

<mosaic_0001>
module attributes {stable_mosaic.version = 11 : i64} {
  func.func @kernel(%arg0: i32, %arg1: memref<26xf32, #tpu.memory_space<smem>>, %arg2: memref<3x512xf32, #tpu.memory_space<vmem>>, %arg3: memref<1x512xf32, #tpu.memory_space<vmem>>) attributes {dimension_semantics = [#tpu.dimension_semantics<parallel>], iteration_bounds = array<i64: 4>, scalar_prefetch = 0 : i64, scratch_operands = 0 : i64, tpu.core_type = #tpu.core_type<tc>, window_params = [{transform_indices = @transform_0, window_bounds = array<i64: 26>}, {transform_indices = @transform_1, window_bounds = array<i64: 3, 512>}, {transform_indices = @transform_2, window_bounds = array<i64: 1, 512>}]} {
    %c0 = arith.constant 0 : index
    %c0_0 = arith.constant 0 : index
    %0 = vector.load %arg2[%c0, %c0_0] : memref<3x512xf32, #tpu.memory_space<vmem>>, vector<1x512xf32>
    %c1 = arith.constant 1 : index
    %c0_1 = arith.constant 0 : index
    %1 = vector.load %arg2[%c1, %c0_1] : memref<3x512xf32, #tpu.memory_space<vmem>>, vector<1x512xf32>
    %c2 = arith.constant 2 : index
    %c0_2 = arith.constant 0 : index
    %2 = vector.load %arg2[%c2, %c0_2] : memref<3x512xf32, #tpu.memory_space<vmem>>, vector<1x512xf32>
    %c0_3 = arith.constant 0 : index
    %3 = memref.load %arg1[%c0_3] : memref<26xf32, #tpu.memory_space<smem>>
    %4 = vector.broadcast %3 : f32 to vector<1x512xf32>
    %5 = arith.mulf %0, %4 : vector<1x512xf32>
    %c1_4 = arith.constant 1 : index
    %6 = memref.load %arg1[%c1_4] : memref<26xf32, #tpu.memory_space<smem>>
    %7 = vector.broadcast %6 : f32 to vector<1x512xf32>
    %8 = arith.mulf %1, %7 : vector<1x512xf32>
    %9 = arith.addf %5, %8 : vector<1x512xf32>
    %c2_5 = arith.constant 2 : index
    %10 = memref.load %arg1[%c2_5] : memref<26xf32, #tpu.memory_space<smem>>
    %11 = vector.broadcast %10 : f32 to vector<1x512xf32>
    %12 = arith.mulf %2, %11 : vector<1x512xf32>
    %13 = arith.addf %9, %12 : vector<1x512xf32>
    %c15 = arith.constant 15 : index
    %14 = memref.load %arg1[%c15] : memref<26xf32, #tpu.memory_space<smem>>
    %15 = vector.broadcast %14 : f32 to vector<1x512xf32>
    %16 = arith.addf %13, %15 : vector<1x512xf32>
    %cst = arith.constant 0.000000e+00 : f32
    %17 = vector.broadcast %cst : f32 to vector<1x512xf32>
    %18 = arith.maximumf %16, %17 : vector<1x512xf32>
    %c20 = arith.constant 20 : index
    %19 = memref.load %arg1[%c20] : memref<26xf32, #tpu.memory_space<smem>>
    %20 = vector.broadcast %19 : f32 to vector<1x512xf32>
    %21 = arith.mulf %18, %20 : vector<1x512xf32>
    %c3 = arith.constant 3 : index
    %22 = memref.load %arg1[%c3] : memref<26xf32, #tpu.memory_space<smem>>
    %23 = vector.broadcast %22 : f32 to vector<1x512xf32>
    %24 = arith.mulf %0, %23 : vector<1x512xf32>
    %c4 = arith.constant 4 : index
    %25 = memref.load %arg1[%c4] : memref<26xf32, #tpu.memory_space<smem>>
    %26 = vector.broadcast %25 : f32 to vector<1x512xf32>
    %27 = arith.mulf %1, %26 : vector<1x512xf32>
    %28 = arith.addf %24, %27 : vector<1x512xf32>
    %c5 = arith.constant 5 : index
    %29 = memref.load %arg1[%c5] : memref<26xf32, #tpu.memory_space<smem>>
    %30 = vector.broadcast %29 : f32 to vector<1x512xf32>
    %31 = arith.mulf %2, %30 : vector<1x512xf32>
    %32 = arith.addf %28, %31 : vector<1x512xf32>
    %c16 = arith.constant 16 : index
    %33 = memref.load %arg1[%c16] : memref<26xf32, #tpu.memory_space<smem>>
    %34 = vector.broadcast %33 : f32 to vector<1x512xf32>
    %35 = arith.addf %32, %34 : vector<1x512xf32>
    %cst_6 = arith.constant 0.000000e+00 : f32
    %36 = vector.broadcast %cst_6 : f32 to vector<1x512xf32>
    %37 = arith.maximumf %35, %36 : vector<1x512xf32>
    %c21 = arith.constant 21 : index
    %38 = memref.load %arg1[%c21] : memref<26xf32, #tpu.memory_space<smem>>
    %39 = vector.broadcast %38 : f32 to vector<1x512xf32>
    %40 = arith.mulf %37, %39 : vector<1x512xf32>
    %41 = arith.addf %21, %40 : vector<1x512xf32>
    %c6 = arith.constant 6 : index
    %42 = memref.load %arg1[%c6] : memref<26xf32, #tpu.memory_space<smem>>
    %43 = vector.broadcast %42 : f32 to vector<1x512xf32>
    %44 = arith.mulf %0, %43 : vector<1x512xf32>
    %c7 = arith.constant 7 : index
    %45 = memref.load %arg1[%c7] : memref<26xf32, #tpu.memory_space<smem>>
    %46 = vector.broadcast %45 : f32 to vector<1x512xf32>
    %47 = arith.mulf %1, %46 : vector<1x512xf32>
    %48 = arith.addf %44, %47 : vector<1x512xf32>
    %c8 = arith.constant 8 : index
    %49 = memref.load %arg1[%c8] : memref<26xf32, #tpu.memory_space<smem>>
    %50 = vector.broadcast %49 : f32 to vector<1x512xf32>
    %51 = arith.mulf %2, %50 : vector<1x512xf32>
    %52 = arith.addf %48, %51 : vector<1x512xf32>
    %c17 = arith.constant 17 : index
    %53 = memref.load %arg1[%c17] : memref<26xf32, #tpu.memory_space<smem>>
    %54 = vector.broadcast %53 : f32 to vector<1x512xf32>
    %55 = arith.addf %52, %54 : vector<1x512xf32>
    %cst_7 = arith.constant 0.000000e+00 : f32
    %56 = vector.broadcast %cst_7 : f32 to vector<1x512xf32>
    %57 = arith.maximumf %55, %56 : vector<1x512xf32>
    %c22 = arith.constant 22 : index
    %58 = memref.load %arg1[%c22] : memref<26xf32, #tpu.memory_space<smem>>
    %59 = vector.broadcast %58 : f32 to vector<1x512xf32>
    %60 = arith.mulf %57, %59 : vector<1x512xf32>
    %61 = arith.addf %41, %60 : vector<1x512xf32>
    %c9 = arith.constant 9 : index
    %62 = memref.load %arg1[%c9] : memref<26xf32, #tpu.memory_space<smem>>
    %63 = vector.broadcast %62 : f32 to vector<1x512xf32>
    %64 = arith.mulf %0, %63 : vector<1x512xf32>
    %c10 = arith.constant 10 : index
    %65 = memref.load %arg1[%c10] : memref<26xf32, #tpu.memory_space<smem>>
    %66 = vector.broadcast %65 : f32 to vector<1x512xf32>
    %67 = arith.mulf %1, %66 : vector<1x512xf32>
    %68 = arith.addf %64, %67 : vector<1x512xf32>
    %c11 = arith.constant 11 : index
    %69 = memref.load %arg1[%c11] : memref<26xf32, #tpu.memory_space<smem>>
    %70 = vector.broadcast %69 : f32 to vector<1x512xf32>
    %71 = arith.mulf %2, %70 : vector<1x512xf32>
    %72 = arith.addf %68, %71 : vector<1x512xf32>
    %c18 = arith.constant 18 : index
    %73 = memref.load %arg1[%c18] : memref<26xf32, #tpu.memory_space<smem>>
    %74 = vector.broadcast %73 : f32 to vector<1x512xf32>
    %75 = arith.addf %72, %74 : vector<1x512xf32>
    %cst_8 = arith.constant 0.000000e+00 : f32
    %76 = vector.broadcast %cst_8 : f32 to vector<1x512xf32>
    %77 = arith.maximumf %75, %76 : vector<1x512xf32>
    %c23 = arith.constant 23 : index
    %78 = memref.load %arg1[%c23] : memref<26xf32, #tpu.memory_space<smem>>
    %79 = vector.broadcast %78 : f32 to vector<1x512xf32>
    %80 = arith.mulf %77, %79 : vector<1x512xf32>
    %81 = arith.addf %61, %80 : vector<1x512xf32>
    %c12 = arith.constant 12 : index
    %82 = memref.load %arg1[%c12] : memref<26xf32, #tpu.memory_space<smem>>
    %83 = vector.broadcast %82 : f32 to vector<1x512xf32>
    %84 = arith.mulf %0, %83 : vector<1x512xf32>
    %c13 = arith.constant 13 : index
    %85 = memref.load %arg1[%c13] : memref<26xf32, #tpu.memory_space<smem>>
    %86 = vector.broadcast %85 : f32 to vector<1x512xf32>
    %87 = arith.mulf %1, %86 : vector<1x512xf32>
    %88 = arith.addf %84, %87 : vector<1x512xf32>
    %c14 = arith.constant 14 : index
    %89 = memref.load %arg1[%c14] : memref<26xf32, #tpu.memory_space<smem>>
    %90 = vector.broadcast %89 : f32 to vector<1x512xf32>
    %91 = arith.mulf %2, %90 : vector<1x512xf32>
    %92 = arith.addf %88, %91 : vector<1x512xf32>
    %c19 = arith.constant 19 : index
    %93 = memref.load %arg1[%c19] : memref<26xf32, #tpu.memory_space<smem>>
    %94 = vector.broadcast %93 : f32 to vector<1x512xf32>
    %95 = arith.addf %92, %94 : vector<1x512xf32>
    %cst_9 = arith.constant 0.000000e+00 : f32
    %96 = vector.broadcast %cst_9 : f32 to vector<1x512xf32>
    %97 = arith.maximumf %95, %96 : vector<1x512xf32>
    %c24 = arith.constant 24 : index
    %98 = memref.load %arg1[%c24] : memref<26xf32, #tpu.memory_space<smem>>
    %99 = vector.broadcast %98 : f32 to vector<1x512xf32>
    %100 = arith.mulf %97, %99 : vector<1x512xf32>
    %101 = arith.addf %81, %100 : vector<1x512xf32>
    %c25 = arith.constant 25 : index
    %102 = memref.load %arg1[%c25] : memref<26xf32, #tpu.memory_space<smem>>
    %103 = vector.broadcast %102 : f32 to vector<1x512xf32>
    %104 = arith.addf %101, %103 : vector<1x512xf32>
    %c0_10 = arith.constant 0 : index
    %c0_11 = arith.constant 0 : index
    %105 = vector.load %arg3[%c0_10, %c0_11] : memref<1x512xf32, #tpu.memory_space<vmem>>, vector<1x512xf32>
    tpu.vector_store %arg3[%c0_10, %c0_11], %104 {strides = array<i32>} : memref<1x512xf32, #tpu.memory_space<vmem>>, vector<1x512xf32>,
    return
  }
  func.func @transform_0(%arg0: i32) -> i32 {
    %c0_i32 = arith.constant 0 : i32
    %c0_i32_0 = arith.constant 0 : i32
    return %c0_i32 : i32
  }
  func.func @transform_1(%arg0: i32) -> (i32, i32) {
    %c0_i32 = arith.constant 0 : i32
    %c0_i32_0 = arith.constant 0 : i32
    return %c0_i32, %arg0 : i32, i32
  }
  func.func @transform_2(%arg0: i32) -> (i32, i32) {
    %c0_i32 = arith.constant 0 : i32
    %c0_i32_0 = arith.constant 0 : i32
    return %c0_i32, %arg0 : i32, i32
  }
}

</mosaic_0001>

<bundles_post_ra>
// kernel: tpu_custom_call.1
= control target key start
LH: loop header
LB: loop body
LE: loop exit
PB: predicated region body
PF: predicated region fallthrough
CT: control target
= control target key end

     0   :  { %7 = vsyncpa [#allocation5], 0  ;;  %s800_s0 = inlined_call_operand.hbm [shape: f32[26], index: 0, kind: input, shape index: {}]   ;;  %s801_s1 = inlined_call_operand.hbm [shape: f32[3,2048], index: 1, kind: input, shape index: {}]   ;;  %s802_s2 = inlined_call_operand.hbm [shape: f32[1,2048], index: 2, kind: output, shape index: {}]  }
   0x1   :  { %8 = vsyncpa [#allocation3], 0 }
   0x2   :  { %10 = vsyncpa [#allocation3 + $0x1], 0 }
   0x3   :  { %11 = vsyncpa [#allocation4], 0 }
   0x4   :  { %13 = vsyncpa [#allocation4 + $0x1], 0  ;;  %s607_s9 = smov 0   ;;  %s609_s10 = smov 0  }
   0x5   :  { %s611_s11 = smov 0   ;;  %s613_s12 = smov 0  }
   0x6 LB: > { %s628_s13 = sadd.s32 4294967295, %s587_s12   ;;  %s378_s14 = sadd.s32 4294967294, %s587_s12   ;;  %s587_s12 = sphi %s613_s12, %s821_s12   ;;  %s583_s11 = sphi %s611_s11, %s820_s11   ;;  %s579_s10 = sphi %s609_s10, %s819_s10   ;;  %s575_s9 = sphi %s607_s9, %s818_s9  }
   0x7   : > { %p60_p0 = scmp.ne.s32.totalorder %s579_s10, %s575_s9  ;;  %p803_p1 = scmp.eq.s32.totalorder %s628_s13, 0 }
   0x8   : > { %p84_p2 = scmp.eq.s32.totalorder %s628_s13, 3  ;;  %p90_p3 = scmp.eq.s32.totalorder %s378_s14, 3 }
   0x9   : > { %p637_p4 = por %p803_p1, %p60_p0  ;;  %p379_p5 = scmp.ge.s32.totalorder %s587_s12, 1 }
   0xa   : > { %p642_p6 = por %p90_p3, %p60_p0  ;;  %p97_p7 = scmp.lt.s32.totalorder %s587_s12, 5 }
   0xb   : > { %s807_s15 = scalar_select %p637_p4, 1, 0 }
   0xc   : > { %s808_s16 = scalar_select %p642_p6, 1, 0 }
   0xd   : > { %p647_p8 = pnand %p379_p5, %p97_p7  ;;  %s652_s18 = sadd.s32 1, %s587_s12  }
   0xe   : > { %s44_s19 = ssub.s32 %s587_s12, %s652_s18  ;;  %s47_s20 = sadd.s32 1, %s583_s11 }
   0xf   : > { %s809_s17 = scalar_select %p647_p8, 1, 0 }
  0x10   : > { %p431_p9 = pneg %p647_p8  ;;  %p45_p11 = scmp.eq.s32.totalorder %s44_s19, 0 }
  0x11   : > { %p54_p12 = scmp.ne.s32.totalorder %s583_s11, %s579_s10  ;;  %p55_p13 = scmp.eq.s32.totalorder %s587_s12, 0 }
  0x12   : > { %p432_p10 = pnand %p431_p9, %p803_p1  ;;  %p444_p0 = scmp.lt.s32.totalorder %s587_s12, 4 }
  0x13   : > { %s589_s21 = smov [#allocation2]   ;;  %p56_p3 = por %p55_p13, %p54_p12 }
  0x14   : > { %434 = dma.hbm_to_smem (!%p432_p10), %s800_s0, 16, %s589_s21, [#allocation5]  }
  0x15   : > { %s669_s24 = scalar_select %p45_p11, %s583_s11, %s47_s20  }
  0x16   : > { %p673_p5 = por %p84_p2, %p54_p12  ;;  %s119_s26 = sand.u32 1, %s583_s11  }
  0x17   : > { %s421_s27 = sshll.u32 %s587_s12, 8  ;;  %s382_s28 = sshll.u32 %s119_s26, 4 }
  0x18   : > { %s810_s25 = scalar_select %p673_p5, 1, 0 }
  0x19   : > { %s682_s3 = scalar_lea.hbm %s801_s1, %s421_s27  ;;  %s123_s4 = scalar_lea.vmem [#allocation6], %s382_s28 }
  0x1a   : > { %s131_s5 = sshll.u32 %s123_s4, 4  ;;  %p684_p7 = pnand %p444_p0, %p56_p3  ;;  %s132_s5 = int_to_ptr.vmem [resolvable:$true] %s131_s5 }
  0x1b   : > { %s120_s7 = scalar_lea.sflag [#allocation3], %s119_s26  ;;  %s491_s8 = scalar_lea.hbm %s682_s3, 256 }
  0x1c   : > { %p492_p2 = scmp.ne.s32.totalorder %s682_s3, %s491_s8  ;;  %p493_p9 = pneg %p684_p7 }
  0x1d   : > { %s496_s20 = scalar_lea.hbm %s801_s1, 1024  ;;  %p497_p12 = scmp.lt.s32.totalorder %s682_s3, %s801_s1 }
  0x1e   : > { %p494_p10 = pnand %p493_p9, %p492_p2  ;;  %p498_p13 = scmp.lt.s32.totalorder %s496_s20, %s491_s8 }
  0x20   : > { %p495_p11 = pneg %p494_p10  ;;  %p499_p0 = por %p498_p13, %p497_p12 }
  0x22   : > { %p500_p3 = pnand %p499_p0, %p495_p11 }
  0x24   : > { %503 = shalt.err (!%p500_p3)
}
  0x25   : > { %s504_s23 = scalar_lea.vmem %s132_s5, 256  ;;  %s590_s26 = smov [#allocation6]  }
  0x26   : > { %p505_p1 = scmp.ne.s32.totalorder %s132_s5, %s504_s23  ;;  %s509_s27 = sshll.u32 %s590_s26, 4  ;;  %s510_s27 = int_to_ptr.vmem [resolvable:$false] %s509_s27 }
  0x27   : > { %s511_s28 = scalar_lea.vmem %s510_s27, 512  ;;  %p512_p2 = scmp.lt.s32.totalorder %s132_s5, %s510_s27 }
  0x28   : > { %p507_p6 = pnand %p505_p1, %p493_p9  ;;  %p513_p10 = scmp.lt.s32.totalorder %s511_s28, %s504_s23 }
  0x2a   : > { %p508_p5 = pneg %p507_p6  ;;  %p514_p4 = por %p513_p10, %p512_p2 }
  0x2c   : > { %p515_p8 = pnand %p514_p4, %p508_p5 }
  0x2e   : > { %518 = shalt.err (!%p515_p8)
}
  0x2f   : > { %438 = dma.hbm_to_vmem [thread:$0]  (!%p684_p7), %s682_s3, 256, %s132_s5, %s120_s7  }
  0x30   : > { %p812_p11 = scmp.ne.s32.totalorder %s809_s17, 0 }
  0x31   : > { %p813_p12 = scmp.eq.s32.totalorder (!%p812_p11), %s628_s13, 0 }
  0x32   : > { %140 = sbr.rel (%p812_p11) target bundleno = 119 (0x77), region = 28 }
  0x37   : > { %562 = dma.done.wait (%p813_p12), [#allocation5], 16   ;;  %p814_p1 = pmov %p813_p12 }
  0x38   : > { %s709_s29 = sand.u32 1, %s579_s10   ;;  %p815_p4 = scmp.ne.s32.totalorder %s807_s15, 0 }
  0x39   : > { %564 = vsyncadd (%p814_p1), [#allocation5], 4294967280  ;;  %s387_s30 = sshll.u32 %s709_s29, 4  ;;  %s147_s4 = scalar_lea.sflag [#allocation3], %s709_s29 }
  0x3a   : > { %s150_s6 = scalar_lea.vmem [#allocation6], %s387_s30 }
  0x3b   : > { %566 = dma.done.wait (%p815_p4), %s147_s4, 256  }
  0x3c   : > { %568 = vsyncadd (%p815_p4), %s147_s4, 4294967040 }
  0x3d   : > { %155 = sfence }
  0x3e   : > { %s179_s17 = sld [smem:[#allocation2]]  ;;  %v719_v0 = vld [vmem:[%s150_s6] ss:$4 sm:$0xf]  ;;  %p816_p8 = scmp.ne.s32.totalorder %s810_s25, 0 }
  0x3f   : > { %s391_s3 = sld [smem:[#allocation2 + $0x1]]  ;;  %v723_v1 = vld [vmem:[%s150_s6 + $0x1] ss:$4 sm:$0xf] }
  0x40   : > { %s392_s5 = sld [smem:[#allocation2 + $0x2]]  ;;  %v725_v2 = vld [vmem:[%s150_s6 + $0x2] ss:$4 sm:$0xf] }
  0x41   : > { %s717_s7 = sld [smem:[#allocation2 + $0xf]] }
  0x42   : > { %s721_s8 = sld [smem:[#allocation2 + $0x14]] }
  0x43   : > { %s395_s14 = sld [smem:[#allocation2 + $0x3]] }
  0x44   : > { %v180_v3 = vstv %s179_s17  ;;  %s396_s19 = sld [smem:[#allocation2 + $0x4]] }
  0x45   : > { %v181_v4 = vmul.f32 %v180_v3, %v719_v0  ;;  %v183_v5 = vstv %s391_s3  ;;  %s397_s15 = sld [smem:[#allocation2 + $0x5]] }
  0x46   : > { %v184_v6 = vmul.f32 %v723_v1, %v183_v5  ;;  %v187_v7 = vstv %s392_s5  ;;  %s398_s20 = sld [smem:[#allocation2 + $0x10]] }
  0x47   : > { %v188_v8 = vmul.f32 %v725_v2, %v187_v7  ;;  %s730_s21 = sld [smem:[#allocation2 + $0x15]]  ;;  %v191_v14 = vstv %s717_s7 }
  0x48   : > { %v185_v9 = vadd.f32 %v184_v6, %v181_v4  ;;  %s400_s22 = sld [smem:[#allocation2 + $0x6]]  ;;  %v195_v30 = vstv %s721_s8 }
  0x49   : > { %v198_v10 = vstv %s395_s14  ;;  %s401_s23 = sld [smem:[#allocation2 + $0x7]] }
  0x4a   : > { %v189_v11 = vadd.f32 %v188_v8, %v185_v9  ;;  %v199_v12 = vmul.f32 %v198_v10, %v719_v0  ;;  %v201_v13 = vstv %s396_s19  ;;  %s402_s26 = sld [smem:[#allocation2 + $0x8]] }
  0x4b   : > { %v202_v15 = vmul.f32 %v723_v1, %v201_v13  ;;  %v205_v16 = vstv %s397_s15  ;;  %s735_s27 = sld [smem:[#allocation2 + $0x11]] }
  0x4c   : > { %v206_v17 = vmul.f32 %v725_v2, %v205_v16  ;;  %s738_s28 = sld [smem:[#allocation2 + $0x16]]  ;;  %v192_v19 = vadd.f32 %v191_v14, %v189_v11  ;;  %v209_v20 = vstv %s398_s20  ;;  %s388_s20 = sshll.u32 %s709_s29, 2 }
  0x4d   : > { %v203_v18 = vadd.f32 %v202_v15, %v199_v12  ;;  %s405_s30 = sld [smem:[#allocation2 + $0x9]]  ;;  %v213_v33 = vstv %s730_s21  ;;  %s171_s21 = scalar_lea.vmem [#allocation7], %s388_s20 }
  0x4e   : > { %v217_v21 = vstv %s400_s22  ;;  %s406_s4 = sld [smem:[#allocation2 + $0xa]]  ;;  %v193_v29 = vmax.f32 %v192_v19, 0.0  ;;  %s296_s22 = sshll.u32 %s171_s21, 4  ;;  %s761_s22 = int_to_ptr.vmem [resolvable:$true] %s296_s22 }
  0x4f   : > { %v207_v22 = vadd.f32 %v206_v17, %v203_v18  ;;  %v218_v23 = vmul.f32 %v217_v21, %v719_v0  ;;  %v220_v24 = vstv %s401_s23  ;;  %s407_s6 = sld [smem:[#allocation2 + $0xb]]  ;;  %s422_s23 = sshll.u32 %s628_s13, 6 }
  0x50   : > { %v221_v25 = vmul.f32 %v723_v1, %v220_v24  ;;  %v224_v26 = vstv %s402_s26  ;;  %s742_s17 = sld [smem:[#allocation2 + $0x12]]  ;;  %v196_v41 = vmul.f32 %v195_v30, %v193_v29  ;;  %s591_s13 = smov [#allocation7]  }
  0x51   : > { %v210_v27 = vadd.f32 %v209_v20, %v207_v22  ;;  %v225_v28 = vmul.f32 %v725_v2, %v224_v26  ;;  %s745_s3 = sld [smem:[#allocation2 + $0x17]]  ;;  %v228_v34 = vstv %s735_s27 }
  0x52   : > { %v222_v31 = vadd.f32 %v221_v25, %v218_v23  ;;  %s410_s5 = sld [smem:[#allocation2 + $0xc]]  ;;  %v232_v45 = vstv %s738_s28  ;;  %s294_s28 = scalar_lea.hbm %s802_s2, %s422_s23 }
  0x53   : > { %v211_v32 = vmax.f32 %v210_v27, 0.0  ;;  %v236_v35 = vstv %s405_s30  ;;  %s411_s7 = sld [smem:[#allocation2 + $0xd]]  ;;  %s282_s30 = scalar_lea.sflag [#allocation4], %s709_s29 }
  0x54   : > { %v226_v36 = vadd.f32 %v225_v28, %v222_v31  ;;  %v237_v37 = vmul.f32 %v236_v35, %v719_v0  ;;  %v239_v38 = vstv %s406_s4  ;;  %s412_s14 = sld [smem:[#allocation2 + $0xe]]  ;;  %s519_s4 = scalar_lea.vmem %s761_s22, 64 }
  0x55   : > { %v240_v39 = vmul.f32 %v723_v1, %v239_v38  ;;  %v243_v40 = vstv %s407_s6  ;;  %s413_s19 = sld [smem:[#allocation2 + $0x13]]  ;;  %v214_v42 = vmul.f32 %v213_v33, %v211_v32  ;;  %p520_p6 = scmp.ne.s32.totalorder %s761_s22, %s519_s4 }
  0x56   : > { %v229_v43 = vadd.f32 %v228_v34, %v226_v36  ;;  %v244_v44 = vmul.f32 %v725_v2, %v243_v40  ;;  %v247_v48 = vstv %s742_s17  ;;  %s414_s8 = sld [smem:[#allocation2 + $0x18]]  ;;  %s523_s6 = sshll.u32 %s591_s13, 4  ;;  %s524_s6 = int_to_ptr.vmem [resolvable:$false] %s523_s6 }
  0x57   : > { %v241_v46 = vadd.f32 %v240_v39, %v237_v37  ;;  %v215_v53 = vadd.f32 %v214_v42, %v196_v41  ;;  %v251_v59 = vstv %s745_s3  ;;  %s415_s15 = sld [smem:[#allocation2 + $0x19]]  ;;  %p521_p5 = pnand %p520_p6, %p816_p8 }
  0x58   : > { %v230_v47 = vmax.f32 %v229_v43, 0.0  ;;  %v255_v49 = vstv %s410_s5  ;;  %s525_s17 = scalar_lea.vmem %s524_s6, 128  ;;  %p526_p9 = scmp.lt.s32.totalorder %s761_s22, %s524_s6 }
  0x59   : > { %v245_v50 = vadd.f32 %v244_v44, %v241_v46  ;;  %v256_v51 = vmul.f32 %v255_v49, %v719_v0  ;;  %v258_v52 = vstv %s411_s7  ;;  %p522_p7 = pneg %p521_p5  ;;  %p527_p13 = scmp.lt.s32.totalorder %s525_s17, %s519_s4 }
  0x5a   : > { %v233_v54 = vmul.f32 %v232_v45, %v230_v47  ;;  %v259_v55 = vmul.f32 %v723_v1, %v258_v52  ;;  %v262_v56 = vstv %s412_s14  ;;  %v276_v1 = vlaneseq }
  0x5b   : > { %v248_v57 = vadd.f32 %v247_v48, %v245_v50  ;;  %v263_v58 = vmul.f32 %v725_v2, %v262_v56  ;;  %v266_v62 = vstv %s413_s19  ;;  %p528_p0 = por %p527_p13, %p526_p9 }
  0x5c   : > { %v260_v60 = vadd.f32 %v259_v55, %v256_v51  ;;  %v234_v63 = vadd.f32 %v233_v54, %v215_v53  ;;  %v270_v5 = vstv %s414_s8  ;;  %vm278_vm0 = vcmp.lt.s32.totalorder %v276_v1, 512 }
  0x5d   : > { %v249_v61 = vmax.f32 %v248_v57, 0.0  ;;  %v274_v2 = vstv %s415_s15  ;;  %p529_p3 = pnand %p528_p0, %p522_p7 }
  0x5e   : > { %v264_v3 = vadd.f32 %v263_v58, %v260_v60 }
  0x5f   : > { %v252_v0 = vmul.f32 %v251_v59, %v249_v61 }
  0x60   : > { %v267_v4 = vadd.f32 %v266_v62, %v264_v3 }
  0x61   : > { %v253_v6 = vadd.f32 %v252_v0, %v234_v63 }
  0x62   : > { %v268_v7 = vmax.f32 %v267_v4, 0.0 }
  0x64   : > { %v271_v8 = vmul.f32 %v270_v5, %v268_v7 }
  0x66   : > { %v272_v9 = vadd.f32 %v271_v8, %v253_v6 }
  0x68   : > { %v275_v10 = vadd.f32 %v274_v2, %v272_v9 }
  0x6a   : > { %280 = vst.msk [vmem:[%s171_s21] sm:$0xf] %vm278_vm0, %v275_v10 }
  0x6b   : > { %532 = shalt.err (!%p529_p3)
}
  0x6c   : > { %s533_s3 = scalar_lea.hbm %s294_s28, 64  ;;  %s537_s7 = scalar_lea.hbm %s802_s2, 256 }
  0x6d   : > { %p534_p2 = scmp.ne.s32.totalorder %s294_s28, %s533_s3  ;;  %p538_p12 = scmp.lt.s32.totalorder %s294_s28, %s802_s2 }
  0x6e   : > { %p539_p1 = scmp.lt.s32.totalorder %s537_s7, %s533_s3 }
  0x6f   : > { %p535_p10 = pnand %p534_p2, %p816_p8 }
  0x70   : > { %p540_p4 = por %p539_p1, %p538_p12 }
  0x71   : > { %p536_p11 = pneg %p535_p10 }
  0x73   : > { %p541_p6 = pnand %p540_p4, %p536_p11 }
  0x75   : > { %544 = shalt.err (!%p541_p6)
}
  0x76   : > { %429 = dma.vmem_to_hbm [thread:$0]  (%p816_p8), %s761_s22, 64, %s294_s28, %s282_s30  }
  0x77 PF: > { %p446_p5 = scmp.ge.s32.totalorder %s587_s12, 2  ;;  %s308_s8 = sand.u32 1, %s575_s9  }
  0x78   : > { %p817_p7 = scmp.ne.s32.totalorder %s808_s16, 0  ;;  %s309_s15 = scalar_lea.sflag [#allocation4], %s308_s8 }
  0x7a   : > { %p440_p9 = pnand %p446_p5, %p817_p7 }
  0x7c   : > { %p441_p13 = pneg %p440_p9 }
  0x7e   : > { %570 = dma.done.wait (%p441_p13), %s309_s15, 64  }
  0x7f   : > { %572 = vsyncadd (%p441_p13), %s309_s15, 4294967232  ;;  %p16_p0 = scmp.ge.s32.totalorder %s652_s18, 6   ;;  %s818_s9 = smov %s579_s10 }
  0x80   : > { %s819_s10 = smov %s583_s11  ;;  %s820_s11 = smov %s669_s24 }
  0x81   : > { %s821_s12 = smov %s652_s18  ;;  %18 = sbr.rel (!%p16_p0) target bundleno = 6 (0x6), region = 80 }
  0x86   :  { %314 = vsyncpa [#allocation3], 1 }
  0x87   :  { %316 = vsyncpa [#allocation3 + $0x1], 1 }
  0x88   :  { %317 = vsyncpa [#allocation4], 1 }
  0x89   :  { %319 = vsyncpa [#allocation4 + $0x1], 1 }
  0x8a   :  { %320 = vsyncpa [#allocation5], 1 }
  0x8b   :  { %322 = vsyncpa [#allocation5 + $0x1], 1 }

</bundles_post_ra>
